<compile_context>
chip_gen: v6e
topology: v6e:2x2x1
jax: 0.10.0
libtpu: 0.0.40
codegen_flags: <defaults>
</compile_context>

<pallas_src>
import numpy as np
import jax
import jax.numpy as jnp
from jax.experimental import pallas as pl
from jax.experimental.pallas import tpu as pltpu


def _round_up(n, m):
    return ((n + m - 1) // m) * m


# ---------------- fused Pallas kernel: 3 dependent matmuls ----------------

def _decoder_fused_kernel(x_ref, w1_ref, wB_ref, wC_ref, bias_ref, o_ref):
    f32 = jnp.float32
    cdt = w1_ref.dtype                       # compute (operand) dtype, bf16
    n1 = w1_ref.shape[1]
    nB = wB_ref.shape[1]
    b1 = bias_ref[:, :n1]                    # static, 128-aligned lane slices
    bB = bias_ref[:, n1:n1 + nB]
    bC = bias_ref[:, n1 + nB:]

    # Stage A: Linear(8 -> 128, zero-padded) + ReLU            (MLP layer 0)
    h = jnp.dot(x_ref[...].astype(cdt), w1_ref[...], preferred_element_type=f32) + b1
    h = jnp.maximum(h, 0.0)
    # Stage B: (MLP layer 1 ∘ conv0) folded, + ReLU
    h = jnp.dot(h.astype(cdt), wB_ref[...], preferred_element_type=f32) + bB
    h = jnp.maximum(h, 0.0)
    # Stage C: (conv1 ∘ nearest-up2x ∘ conv2) folded -> flat 16x16 image
    y = jnp.dot(h.astype(cdt), wC_ref[...], preferred_element_type=f32) + bC
    o_ref[...] = y.astype(o_ref.dtype)


def decoder_apply(x, ops, image_dims, max_batch_tile=512):
    """Per-example hot path: exactly one pallas_call, batch-tiled."""
    B, Din = x.shape
    H, W = image_dims
    TB = min(max_batch_tile, _round_up(max(B, 1), 8))   # f32 sublane multiple
    B_pad = _round_up(B, TB)
    x_p = x if B_pad == B else jnp.pad(x, ((0, B_pad - B), (0, 0)))

    out_flat = pl.pallas_call(
        _decoder_fused_kernel,
        out_shape=jax.ShapeDtypeStruct((B_pad, H * W), jnp.float32),
        grid=(B_pad // TB,),
        in_specs=[
            pl.BlockSpec((TB, Din), lambda i: (i, 0)),            # streamed x tile
            pl.BlockSpec(ops["w1"].shape, lambda i: (0, 0)),      # resident operators
            pl.BlockSpec(ops["wB"].shape, lambda i: (0, 0)),
            pl.BlockSpec(ops["wC"].shape, lambda i: (0, 0)),
            pl.BlockSpec(ops["bias"].shape, lambda i: (0, 0)),
        ],
        out_specs=pl.BlockSpec((TB, H * W), lambda i: (i, 0)),
        compiler_params=pltpu.CompilerParams(
            dimension_semantics=("parallel",)),
    )(x_p, ops["w1"], ops["wB"], ops["wC"], ops["bias"])
    return out_flat[:B].reshape(B, H, W)


# -------- one-time weight preparation (conv/upsample/linear folding) --------

def _conv_as_dense(w_hwio, H, W):
    """kxk 'same' stride-1 conv as dense (Cin*H*W, Cout*H*W) matrix acting on
    NCHW-flat row-vector activations:  out_flat = in_flat @ M."""
    w = np.asarray(w_hwio, np.float32)
    k, _, Cin, Cout = w.shape
    p = k // 2
    dy = np.arange(H)[:, None] - np.arange(H)[None, :] + p        # [iy, oy]
    dx = np.arange(W)[:, None] - np.arange(W)[None, :] + p        # [ix, ox]
    my = (dy >= 0) & (dy < k)
    mx = (dx >= 0) & (dx < k)
    dyc = np.clip(dy, 0, k - 1)
    dxc = np.clip(dx, 0, k - 1)
    taps = w[dyc[:, :, None, None], dxc[None, None, :, :], :, :]  # (H,H,W,W,Cin,Cout)
    valid = (my[:, :, None, None] & mx[None, None, :, :]).astype(np.float32)
    taps = taps * valid[..., None, None]
    # rows = (cin, iy, ix), cols = (cout, oy, ox)
    return np.transpose(taps, (4, 0, 2, 5, 1, 3)).reshape(Cin * H * W, Cout * H * W)


def _upsample2x_as_dense(C, H, W):
    """Nearest-neighbour 2x upsample as constant 0/1 (C*H*W, C*2H*2W) matrix."""
    s = 2
    Hh, Wh = H * s, W * s
    c = np.arange(C)[:, None, None]
    hy = np.arange(Hh)[None, :, None]
    hx = np.arange(Wh)[None, None, :]
    rows = (c * H * W + (hy // s) * W + (hx // s)).reshape(-1)
    cols = (c * Hh * Wh + hy * Wh + hx).reshape(-1)
    u = np.zeros((C * H * W, C * Hh * Wh), np.float32)
    u[rows, cols] = 1.0
    return u


def build_decoder_ops(params, hidden_shape, image_dims, compute_dtype=jnp.bfloat16):
    """Fold convs, the 2x upsample, and adjacent linear stages into three dense
    operators on NCHW-flat activations.  Pure weight transform, done once."""
    C0, h0, w0 = hidden_shape                      # (4, 8, 8)
    H1, W1 = image_dims                            # (16, 16)
    hw0 = h0 * w0
    c_mid = np.asarray(params["cw1"]).shape[-1]    # channels entering final conv (4)

    m0 = _conv_as_dense(params["cw0"], h0, w0)     # (256, 512)
    m1 = _conv_as_dense(params["cw1"], h0, w0)     # (512, 256)
    m2_hi = _conv_as_dense(params["cw2"], H1, W1)  # (1024, 256)
    up = _upsample2x_as_dense(c_mid, h0, w0)       # (256, 1024)
    m2 = up @ m2_hi                                # upsample fused into conv2: (256, 256)

    c0 = np.repeat(np.asarray(params["cb0"], np.float32), hw0)[None, :]
    c1 = np.repeat(np.asarray(params["cb1"], np.float32), hw0)[None, :]
    c2 = np.repeat(np.asarray(params["cb2"], np.float32), H1 * W1)[None, :]

    w1 = np.asarray(params["w1"], np.float32)
    b1 = np.asarray(params["b1"], np.float32)[None, :]
    w2 = np.asarray(params["w2"], np.float32)
    b2 = np.asarray(params["b2"], np.float32)[None, :]

    # Fold MLP-linear-2 with conv0 (no nonlinearity in between): exact.
    wB = w2 @ m0                                   # (32, 512)
    bB = b2 @ m0 + c0                              # (1, 512)
    # Fold conv1 with (upsample ∘ conv2) (no nonlinearity in between): exact.
    wC = m1 @ m2                                   # (512, 256)
    bC = c1 @ m2 + c2                              # (1, 256)

    # Zero-pad first MLP layer 32 -> 128 lanes (exact: ReLU(0)=0, zero wB rows).
    n_hid = w1.shape[1]
    n_pad = _round_up(n_hid, 128)
    w1p = np.zeros((w1.shape[0], n_pad), np.float32); w1p[:, :n_hid] = w1
    b1p = np.zeros((1, n_pad), np.float32);           b1p[:, :n_hid] = b1
    wBp = np.zeros((n_pad, wB.shape[1]), np.float32); wBp[:n_hid, :] = wB

    bias = np.concatenate([b1p, bB, bC], axis=1)   # (1, 128+512+256) single f32 operand

    return {
        "w1": jnp.asarray(w1p, compute_dtype),
        "wB": jnp.asarray(wBp, compute_dtype),
        "wC": jnp.asarray(wC, compute_dtype),
        "bias": jnp.asarray(bias, jnp.float32),
    }


# ---------------- pure-JAX (f32) reference for verification ----------------

def decoder_reference(x, params, hidden_shape):
    C0, hh, ww = hidden_shape
    B = x.shape[0]
    h = jnp.maximum(x @ params["w1"] + params["b1"], 0.0)
    h = h @ params["w2"] + params["b2"]
    h = h.reshape(B, C0, hh, ww).transpose(0, 2, 3, 1)

    def conv(a, w, b):
        y = jax.lax.conv_general_dilated(
            a, w, window_strides=(1, 1), padding="SAME",
            dimension_numbers=("NHWC", "HWIO", "NHWC"))
        return y + b

    y = jnp.maximum(conv(h, params["cw0"], params["cb0"]), 0.0)
    y = conv(y, params["cw1"], params["cb1"])
    y = jnp.repeat(jnp.repeat(y, 2, axis=1), 2, axis=2)
    y = conv(y, params["cw2"], params["cb2"])
    return y[..., 0]


if __name__ == "__main__":
    fc_dims = [8, 32, 256]
    conv_channels = [[4, 8, 4], [4, 1]]
    kernel_size = 3
    image_dims = (16, 16)
    n_layers = len(conv_channels)
    hidden_shape = (conv_channels[0][0],
                    image_dims[0] // 2 ** (n_layers - 1),
                    image_dims[1] // 2 ** (n_layers - 1))
    assert hidden_shape[0] * hidden_shape[1] * hidden_shape[2] == fc_dims[-1]

    key = jax.random.PRNGKey(0)
    ks = jax.random.split(key, 12)

    def init(k, shape, scale=0.2):
        return scale * jax.random.normal(k, shape, dtype=jnp.float32)

    params = {
        "w1": init(ks[0], (fc_dims[0], fc_dims[1])),
        "b1": init(ks[1], (fc_dims[1],)),
        "w2": init(ks[2], (fc_dims[1], fc_dims[2])),
        "b2": init(ks[3], (fc_dims[2],)),
        "cw0": init(ks[4], (kernel_size, kernel_size, 4, 8)),   # HWIO
        "cb0": init(ks[5], (8,)),
        "cw1": init(ks[6], (kernel_size, kernel_size, 8, 4)),
        "cb1": init(ks[7], (4,)),
        "cw2": init(ks[8], (kernel_size, kernel_size, 4, 1)),
        "cb2": init(ks[9], (1,)),
    }

    # One-time weight preparation (outside the per-example hot path).
    ops = jax.block_until_ready(build_decoder_ops(params, hidden_shape, image_dims))

    # --- small-batch check (batch=2, latent=8) ---
    x = jax.random.normal(ks[10], (2, fc_dims[0]), dtype=jnp.float32)
    out = jax.block_until_ready(decoder_apply(x, ops, image_dims))
    assert out.shape == (2, image_dims[0], image_dims[1]), out.shape
    ref = decoder_reference(x, params, hidden_shape)
    err = float(jnp.max(jnp.abs(out - ref)))
    # bf16 matmul operands (f32 accumulation) -> slightly looser tolerance than pure f32
    assert jnp.allclose(out, ref, rtol=5e-2, atol=5e-2), err

    # --- larger-batch check exercising batch tiling / padding (grid > 1) ---
    xb = jax.random.normal(ks[11], (600, fc_dims[0]), dtype=jnp.float32)
    outb = jax.block_until_ready(decoder_apply(xb, ops, image_dims))
    refb = decoder_reference(xb, params, hidden_shape)
    errb = float(jnp.max(jnp.abs(outb - refb)))
    assert outb.shape == (600, image_dims[0], image_dims[1]), outb.shape
    assert jnp.allclose(outb, refb, rtol=5e-2, atol=5e-2), errb

    print("KERNEL_OK")
</pallas_src>

<mosaic_0001>
module attributes {stable_mosaic.version = 11 : i64} {
  func.func @_decoder_fused_kernel(%arg0: i32, %arg1: memref<8x8xf32, #tpu.memory_space<vmem>>, %arg2: memref<8x128xbf16, #tpu.memory_space<vmem>>, %arg3: memref<128x512xbf16, #tpu.memory_space<vmem>>, %arg4: memref<512x256xbf16, #tpu.memory_space<vmem>>, %arg5: memref<1x896xf32, #tpu.memory_space<vmem>>, %arg6: memref<8x256xf32, #tpu.memory_space<vmem>>) attributes {dimension_semantics = [#tpu.dimension_semantics<parallel>], iteration_bounds = array<i64: 1>, scalar_prefetch = 0 : i64, scratch_operands = 0 : i64, tpu.core_type = #tpu.core_type<tc>, window_params = [{transform_indices = @transform_0, window_bounds = array<i64: 8, 8>}, {pipeline_mode = #tpu.pipeline_mode<synchronous>, transform_indices = @transform_1, window_bounds = array<i64: 8, 128>}, {pipeline_mode = #tpu.pipeline_mode<synchronous>, transform_indices = @transform_2, window_bounds = array<i64: 128, 512>}, {pipeline_mode = #tpu.pipeline_mode<synchronous>, transform_indices = @transform_3, window_bounds = array<i64: 512, 256>}, {pipeline_mode = #tpu.pipeline_mode<synchronous>, transform_indices = @transform_4, window_bounds = array<i64: 1, 896>}, {transform_indices = @transform_5, window_bounds = array<i64: 8, 256>}]} {
    %c0 = arith.constant 0 : index
    %c0_0 = arith.constant 0 : index
    %0 = vector.load %arg5[%c0, %c0_0] : memref<1x896xf32, #tpu.memory_space<vmem>>, vector<1x128xf32>
    %c0_1 = arith.constant 0 : index
    %c128 = arith.constant 128 : index
    %1 = vector.load %arg5[%c0_1, %c128] : memref<1x896xf32, #tpu.memory_space<vmem>>, vector<1x512xf32>
    %c0_2 = arith.constant 0 : index
    %c640 = arith.constant 640 : index
    %2 = vector.load %arg5[%c0_2, %c640] : memref<1x896xf32, #tpu.memory_space<vmem>>, vector<1x256xf32>
    %c0_3 = arith.constant 0 : index
    %c0_4 = arith.constant 0 : index
    %3 = vector.load %arg1[%c0_3, %c0_4] : memref<8x8xf32, #tpu.memory_space<vmem>>, vector<8x8xf32>
    %4 = arith.truncf %3 : vector<8x8xf32> to vector<8x8xbf16>
    %c0_5 = arith.constant 0 : index
    %c0_6 = arith.constant 0 : index
    %5 = vector.load %arg2[%c0_5, %c0_6] : memref<8x128xbf16, #tpu.memory_space<vmem>>, vector<8x128xbf16>
    %cst = arith.constant dense<0.000000e+00> : vector<8x128xf32>
    %6 = tpu.matmul %4, %5, %cst {dimension_numbers = #tpu.dot_dimension_numbers<[1], [0], [0], [1], [0, 0, 1, 1], [], []>} : vector<8x8xbf16>, vector<8x128xbf16>, vector<8x128xf32> -> vector<8x128xf32>
    %7 = vector.broadcast %0 : vector<1x128xf32> to vector<8x128xf32>
    %8 = arith.addf %6, %7 : vector<8x128xf32>
    %cst_7 = arith.constant 0.000000e+00 : f32
    %9 = vector.broadcast %cst_7 : f32 to vector<8x128xf32>
    %10 = arith.maximumf %8, %9 : vector<8x128xf32>
    %11 = arith.truncf %10 : vector<8x128xf32> to vector<8x128xbf16>
    %c0_8 = arith.constant 0 : index
    %c0_9 = arith.constant 0 : index
    %12 = vector.load %arg3[%c0_8, %c0_9] : memref<128x512xbf16, #tpu.memory_space<vmem>>, vector<128x512xbf16>
    %cst_10 = arith.constant dense<0.000000e+00> : vector<8x512xf32>
    %13 = tpu.matmul %11, %12, %cst_10 {dimension_numbers = #tpu.dot_dimension_numbers<[1], [0], [0], [1], [0, 0, 1, 1], [], []>} : vector<8x128xbf16>, vector<128x512xbf16>, vector<8x512xf32> -> vector<8x512xf32>
    %14 = vector.broadcast %1 : vector<1x512xf32> to vector<8x512xf32>
    %15 = arith.addf %13, %14 : vector<8x512xf32>
    %cst_11 = arith.constant 0.000000e+00 : f32
    %16 = vector.broadcast %cst_11 : f32 to vector<8x512xf32>
    %17 = arith.maximumf %15, %16 : vector<8x512xf32>
    %18 = arith.truncf %17 : vector<8x512xf32> to vector<8x512xbf16>
    %c0_12 = arith.constant 0 : index
    %c0_13 = arith.constant 0 : index
    %19 = vector.load %arg4[%c0_12, %c0_13] : memref<512x256xbf16, #tpu.memory_space<vmem>>, vector<512x256xbf16>
    %cst_14 = arith.constant dense<0.000000e+00> : vector<8x256xf32>
    %20 = tpu.matmul %18, %19, %cst_14 {dimension_numbers = #tpu.dot_dimension_numbers<[1], [0], [0], [1], [0, 0, 1, 1], [], []>} : vector<8x512xbf16>, vector<512x256xbf16>, vector<8x256xf32> -> vector<8x256xf32>
    %21 = vector.broadcast %2 : vector<1x256xf32> to vector<8x256xf32>
    %22 = arith.addf %20, %21 : vector<8x256xf32>
    %c0_15 = arith.constant 0 : index
    %c0_16 = arith.constant 0 : index
    %23 = vector.load %arg6[%c0_15, %c0_16] : memref<8x256xf32, #tpu.memory_space<vmem>>, vector<8x256xf32>
    tpu.vector_store %arg6[%c0_15, %c0_16], %22 {strides = array<i32>} : memref<8x256xf32, #tpu.memory_space<vmem>>, vector<8x256xf32>,
    return
  }
  func.func @transform_0(%arg0: i32) -> (i32, i32) {
    %c0_i32 = arith.constant 0 : i32
    %c0_i32_0 = arith.constant 0 : i32
    return %arg0, %c0_i32 : i32, i32
  }
  func.func @transform_1(%arg0: i32) -> (i32, i32) {
    %c0_i32 = arith.constant 0 : i32
    %c0_i32_0 = arith.constant 0 : i32
    %c0_i32_1 = arith.constant 0 : i32
    return %c0_i32, %c0_i32_0 : i32, i32
  }
  func.func @transform_2(%arg0: i32) -> (i32, i32) {
    %c0_i32 = arith.constant 0 : i32
    %c0_i32_0 = arith.constant 0 : i32
    %c0_i32_1 = arith.constant 0 : i32
    return %c0_i32, %c0_i32_0 : i32, i32
  }
  func.func @transform_3(%arg0: i32) -> (i32, i32) {
    %c0_i32 = arith.constant 0 : i32
    %c0_i32_0 = arith.constant 0 : i32
    %c0_i32_1 = arith.constant 0 : i32
    return %c0_i32, %c0_i32_0 : i32, i32
  }
  func.func @transform_4(%arg0: i32) -> (i32, i32) {
    %c0_i32 = arith.constant 0 : i32
    %c0_i32_0 = arith.constant 0 : i32
    %c0_i32_1 = arith.constant 0 : i32
    return %c0_i32, %c0_i32_0 : i32, i32
  }
  func.func @transform_5(%arg0: i32) -> (i32, i32) {
    %c0_i32 = arith.constant 0 : i32
    %c0_i32_0 = arith.constant 0 : i32
    return %arg0, %c0_i32 : i32, i32
  }
}

</mosaic_0001>

<bundles_post_ra>
// kernel: tpu_custom_call.1
= control target key start
LH: loop header
LB: loop body
LE: loop exit
PB: predicated region body
PF: predicated region fallthrough
CT: control target
= control target key end

     0   :  { %10 = vsyncpa [#allocation3], 0  ;;  %s1370_s0 = inlined_call_operand.hbm [shape: f32[8,8], index: 0, kind: input, shape index: {}]   ;;  %s1371_s1 = inlined_call_operand.hbm [shape: bf16[8,128], index: 1, kind: input, shape index: {}]   ;;  %s1372_s2 = inlined_call_operand.hbm [shape: bf16[128,512], index: 2, kind: input, shape index: {}]   ;;  %s1373_s3 = inlined_call_operand.hbm [shape: bf16[512,256], index: 3, kind: input, shape index: {}]   ;;  %s1374_s4 = inlined_call_operand.vmem [shape: f32[1,896], index: 4, kind: input, shape index: {}]   ;;  %s1375_s5 = inlined_call_operand.hbm [shape: f32[8,256], index: 5, kind: output, shape index: {}]  }
   0x1   :  { %11 = vsyncpa [#allocation6], 0 }
   0x2   :  { %12 = vsyncpa [#allocation9], 0 }
   0x3   :  { %13 = vsyncpa [#allocation4], 0  ;;  %s1304_s18 = smov [#allocation5]   ;;  %s1305_s20 = smov [#allocation2]  }
   0x4   :  { %s30_s19 = sshll.u32 %s1304_s18, 4  ;;  %s20_s21 = sshll.u32 %s1305_s20, 4  ;;  %s31_s19 = int_to_ptr.vmem [resolvable:$true] %s30_s19  ;;  %s21_s21 = int_to_ptr.vmem [resolvable:$true] %s20_s21 }
   0x5   :  { %s1204_s22 = scalar_lea.vmem %s31_s19, 64  ;;  %p1209_p1 = scmp.lt.s32.totalorder %s31_s19, %s31_s19 }
   0x6   :  { %p1205_p0 = scmp.ne.s32.totalorder %s31_s19, %s1204_s22  ;;  %p1210_p2 = scmp.lt.s32.totalorder %s1204_s22, %s1204_s22 }
   0x8   :  { %p1211_p3 = por %p1210_p2, %p1209_p1 }
   0xa   :  { %p1212_p4 = pnand %p1211_p3, %p1205_p0 }
   0xc   :  { %1215 = shalt.err (!%p1212_p4)
}
   0xd   :  { %33 = dma.hbm_to_vmem [thread:$0]  %s1371_s1, 64, %s31_s19, [#allocation6]  }
   0xe   :  { %s1224_s25 = scalar_lea.vmem %s21_s21, 128  ;;  %p1229_p6 = scmp.lt.s32.totalorder %s21_s21, %s21_s21 }
   0xf   :  { %p1225_p5 = scmp.ne.s32.totalorder %s21_s21, %s1224_s25  ;;  %p1230_p7 = scmp.lt.s32.totalorder %s1224_s25, %s1224_s25 }
  0x11   :  { %p1231_p8 = por %p1230_p7, %p1229_p6 }
  0x13   :  { %p1232_p9 = pnand %p1231_p8, %p1225_p5 }
  0x15   :  { %1235 = shalt.err (!%p1232_p9)
}
  0x16   :  { %23 = dma.hbm_to_vmem [thread:$0]  %s1370_s0, 128, %s21_s21, [#allocation3]  }
  0x17   :  { %s1306_s28 = smov [#allocation7]  }
  0x18   :  { %s39_s29 = sshll.u32 %s1306_s28, 4  ;;  %s40_s29 = int_to_ptr.vmem [resolvable:$true] %s39_s29 }
  0x19   :  { %s1244_s30 = scalar_lea.vmem %s40_s29, 4096  ;;  %p1249_p11 = scmp.lt.s32.totalorder %s40_s29, %s40_s29 }
  0x1a   :  { %p1245_p10 = scmp.ne.s32.totalorder %s40_s29, %s1244_s30  ;;  %p1250_p12 = scmp.lt.s32.totalorder %s1244_s30, %s1244_s30 }
  0x1c   :  { %p1251_p13 = por %p1250_p12, %p1249_p11 }
  0x1e   :  { %p1252_p0 = pnand %p1251_p13, %p1245_p10 }
  0x20   :  { %1255 = shalt.err (!%p1252_p0)
}
  0x21   :  { %s1307_s1 = smov 256   ;;  %s1308_s6 = smov 16  }
  0x22   :  { %45 = dma.hbm_to_vmem [thread:$0]  %s1372_s2, 4096, %s40_s29, [#allocation6], %s1307_s1, %s1307_s1, %s1308_s6  }
  0x23   :  { %s1309_s9 = smov [#allocation8]  }
  0x24   :  { %s51_s10 = sshll.u32 %s1309_s9, 4  ;;  %s52_s10 = int_to_ptr.vmem [resolvable:$true] %s51_s10 }
  0x25   :  { %s1264_s0 = scalar_lea.vmem %s52_s10, 8192  ;;  %p1269_p2 = scmp.lt.s32.totalorder %s52_s10, %s52_s10 }
  0x26   :  { %p1265_p1 = scmp.ne.s32.totalorder %s52_s10, %s1264_s0  ;;  %p1270_p3 = scmp.lt.s32.totalorder %s1264_s0, %s1264_s0 }
  0x28   :  { %p1271_p4 = por %p1270_p3, %p1269_p2 }
  0x2a   :  { %p1272_p5 = pnand %p1271_p4, %p1265_p1 }
  0x2c   :  { %1275 = shalt.err (!%p1272_p5)
}
  0x2d   :  { %s1310_s11 = smov 128   ;;  %s1311_s12 = smov 8  }
  0x2e   :  { %57 = dma.hbm_to_vmem [thread:$0]  %s1373_s3, 8192, %s52_s10, [#allocation9], %s1310_s11, %s1310_s11, %s1311_s12  }
  0x2f   :  { %1296 = dma.done.wait [#allocation3], 128  }
  0x30   :  { %1297 = vsyncadd [#allocation3], 4294967168 }
  0x31   :  { %1298 = dma.done.wait [#allocation6], 4160  }
  0x32   :  { %1299 = vsyncadd [#allocation6], 4294963136 }
  0x33   :  { %1300 = dma.done.wait [#allocation9], 8192  }
  0x34   :  { %1301 = vsyncadd [#allocation9], 4294959104  ;;  %v1312_v0 = vmov 0.0   ;;  %vm1313_vm0 = vmmov 0   ;;  %vm89_vm1 = vcmask 1043456   ;;  %v76_v2 = vld [vmem:[#allocation2] sm:$0xff] }
  0x35   :  { %1034 = vmatprep.subr.bf16.mxu0 %v1312_v0  ;;  %1036 = vmatprep.mubr.msk.bf16.mxu0 %vm1313_vm0, %v1312_v0  ;;  %v78_v1 = vld [vmem:[#allocation5] sm:$0xf]  ;;  %v77_v4 = vpack.c.bf16 %v76_v2, %v76_v2  ;;  %v1052_v5 = vld [vmem:[#allocation7 + $0xe4] ss:$16 sps:$4 sm:$0xff]   ;;  %vm85_vm2 = vcmask 64512   ;;  %v1314_v37 = vmov 0  }
  0x36   :  { %v91_v3 = vsel %vm89_vm1, %v78_v1, 0  ;;  %v1054_v6 = vld [vmem:[#allocation7 + $0xe8] ss:$16 sps:$4 sm:$0xff]   ;;  %v1056_v7 = vld [vmem:[#allocation7 + $0xec] ss:$16 sps:$4 sm:$0xff]   ;;  %348 = vmatprep.subr.bf16.mxu1 %v1052_v5  ;;  %380 = vmatprep.mubr.bf16.mxu1 %v1314_v37  ;;  %s1315_s19 = smov [#allocation10]  }
  0x37   :  { %1035 = vmatpush3.bf16.msra.mxu0 %v91_v3  ;;  %v1057_v8 = vld [vmem:[#allocation7 + $0xe0] ss:$16 sps:$4 sm:$0xff]   ;;  %v1058_v9 = vld [vmem:[#allocation7 + $0xc4] ss:$16 sps:$4 sm:$0xff]   ;;  %v1060_v10 = vld [vmem:[#allocation7 + $0xc8] ss:$16 sps:$4 sm:$0xff]  }
  0x38   :  { %389 = vmatprep.subr.bf16.mxu0 %v1056_v7  ;;  %349 = vmatpush1.bf16.msra.mxu1 %v1057_v8  ;;  %v1062_v11 = vld [vmem:[#allocation7 + $0xcc] ss:$16 sps:$4 sm:$0xff]   ;;  %v1063_v12 = vld [vmem:[#allocation7 + $0xc0] ss:$16 sps:$4 sm:$0xff]   ;;  %v1064_v13 = vld [vmem:[#allocation7 + $0xa4] ss:$16 sps:$4 sm:$0xff]  }
  0x39   :  { %350 = vmatprep.subr.bf16.mxu1 %v1058_v9  ;;  %v1068_v14 = vld [vmem:[#allocation7 + $0xac] ss:$16 sps:$4 sm:$0xff]   ;;  %v1069_v15 = vld [vmem:[#allocation7 + $0xa0] ss:$16 sps:$4 sm:$0xff]   ;;  %v1066_v16 = vld [vmem:[#allocation7 + $0xa8] ss:$16 sps:$4 sm:$0xff]  }
  0x3a   :  { %1037 = vmatmul.mubr.msk.bf16.vlgmr.msra.gmra.mxu0 %vm85_vm2, %v77_v4  ;;  %v1070_v17 = vld [vmem:[#allocation7 + $0x84] ss:$16 sps:$4 sm:$0xff]   ;;  %v1074_v18 = vld [vmem:[#allocation7 + $0x8c] ss:$16 sps:$4 sm:$0xff]   ;;  %v1072_v19 = vld [vmem:[#allocation7 + $0x88] ss:$16 sps:$4 sm:$0xff]  }
  0x3b   :  { %390 = vmatpush1.bf16.msra.mxu0 %v1054_v6  ;;  %v1075_v20 = vld [vmem:[#allocation7 + $0x80] ss:$16 sps:$4 sm:$0xff]   ;;  %v1076_v21 = vld [vmem:[#allocation7 + $0x64] ss:$16 sps:$4 sm:$0xff]   ;;  %v1080_v22 = vld [vmem:[#allocation7 + $0x6c] ss:$16 sps:$4 sm:$0xff]   ;;  %421 = vmatprep.mubr.bf16.mxu0 %v1314_v37 }
  0x3c   :  { %391 = vmatprep.subr.bf16.mxu0 %v1062_v11  ;;  %351 = vmatpush1.bf16.msra.mxu1 %v1063_v12  ;;  %v1078_v23 = vld [vmem:[#allocation7 + $0x68] ss:$16 sps:$4 sm:$0xff]   ;;  %v1081_v24 = vld [vmem:[#allocation7 + $0x60] ss:$16 sps:$4 sm:$0xff]   ;;  %v1082_v25 = vld [vmem:[#allocation7 + $0x44] ss:$16 sps:$4 sm:$0xff]  }
  0x3d   :  { %352 = vmatprep.subr.bf16.mxu1 %v1064_v13  ;;  %v1086_v26 = vld [vmem:[#allocation7 + $0x4c] ss:$16 sps:$4 sm:$0xff]   ;;  %v1087_v27 = vld [vmem:[#allocation7 + $0x40] ss:$16 sps:$4 sm:$0xff]   ;;  %v1084_v28 = vld [vmem:[#allocation7 + $0x48] ss:$16 sps:$4 sm:$0xff]  }
  0x3e   :  { %v1088_v29 = vld [vmem:[#allocation7 + $0x24] ss:$16 sps:$4 sm:$0xff]   ;;  %v1092_v30 = vld [vmem:[#allocation7 + $0x2c] ss:$16 sps:$4 sm:$0xff]   ;;  %v1090_v31 = vld [vmem:[#allocation7 + $0x28] ss:$16 sps:$4 sm:$0xff]  }
  0x3f   :  { %392 = vmatpush1.bf16.msra.mxu0 %v1060_v10  ;;  %v1093_v32 = vld [vmem:[#allocation7 + $0x20] ss:$16 sps:$4 sm:$0xff]   ;;  %v1094_v33 = vld [vmem:[#allocation7 + $0x4] ss:$16 sps:$4 sm:$0xff]   ;;  %v1098_v34 = vld [vmem:[#allocation7 + $0xc] ss:$16 sps:$4 sm:$0xff]  }
  0x40   :  { %393 = vmatprep.subr.bf16.mxu0 %v1068_v14  ;;  %353 = vmatpush1.bf16.msra.mxu1 %v1069_v15  ;;  %v1096_v35 = vld [vmem:[#allocation7 + $0x8] ss:$16 sps:$4 sm:$0xff]   ;;  %v1099_v36 = vld [vmem:[#allocation7] ss:$16 sps:$4 sm:$0xff]   ;;  %v1102_v38 = vld [vmem:[#allocation8 + $0x74] ss:$8 sps:$4 sm:$0xff]  }
  0x41   :  { %354 = vmatprep.subr.bf16.mxu1 %v1070_v17  ;;  %v1105_v39 = vld [vmem:[#allocation8 + $0x174] ss:$8 sps:$4 sm:$0xff]   ;;  %v1100_v46 = vld [vmem:[#allocation8 + $0x70] ss:$8 sps:$4 sm:$0xff]   ;;  %v1108_v49 = vld [vmem:[#allocation8 + $0x64] ss:$8 sps:$4 sm:$0xff]  }
  0x42   :  { %v934_v40 = vld [vmem:[%s1374_s4] ss:$0 sm:$0xff]  ;;  %v1103_v47 = vld [vmem:[#allocation8 + $0x170] ss:$8 sps:$4 sm:$0xff]   ;;  %v1111_v50 = vld [vmem:[#allocation8 + $0x164] ss:$8 sps:$4 sm:$0xff]  }
  0x43   :  { %394 = vmatpush1.bf16.msra.mxu0 %v1066_v16  ;;  %v1106_v52 = vld [vmem:[#allocation8 + $0x60] ss:$8 sps:$4 sm:$0xff]   ;;  %v1114_v54 = vld [vmem:[#allocation8 + $0x54] ss:$8 sps:$4 sm:$0xff]   ;;  %v1112_v56 = vld [vmem:[#allocation8 + $0x50] ss:$8 sps:$4 sm:$0xff]  }
  0x44   :  { %395 = vmatprep.subr.bf16.mxu0 %v1074_v18  ;;  %355 = vmatpush1.bf16.msra.mxu1 %v1075_v20  ;;  %v1109_v53 = vld [vmem:[#allocation8 + $0x160] ss:$8 sps:$4 sm:$0xff]   ;;  %v1117_v55 = vld [vmem:[#allocation8 + $0x154] ss:$8 sps:$4 sm:$0xff]   ;;  %v1115_v57 = vld [vmem:[#allocation8 + $0x150] ss:$8 sps:$4 sm:$0xff]  }
  0x45   :  { %356 = vmatprep.subr.bf16.mxu1 %v1076_v21  ;;  %v1120_v58 = vld [vmem:[#allocation8 + $0x44] ss:$8 sps:$4 sm:$0xff]   ;;  %v1118_v60 = vld [vmem:[#allocation8 + $0x40] ss:$8 sps:$4 sm:$0xff]   ;;  %v1126_v62 = vld [vmem:[#allocation8 + $0x34] ss:$8 sps:$4 sm:$0xff]  }
  0x46   :  { %v1123_v59 = vld [vmem:[#allocation8 + $0x144] ss:$8 sps:$4 sm:$0xff]   ;;  %v1121_v61 = vld [vmem:[#allocation8 + $0x140] ss:$8 sps:$4 sm:$0xff]   ;;  %v1129_v63 = vld [vmem:[#allocation8 + $0x134] ss:$8 sps:$4 sm:$0xff]  }
  0x47   :  { %396 = vmatpush1.bf16.msra.mxu0 %v1072_v19  ;;  %v1124_v0 = vld [vmem:[#allocation8 + $0x30] ss:$8 sps:$4 sm:$0xff]   ;;  %v1132_v2 = vld [vmem:[#allocation8 + $0x24] ss:$8 sps:$4 sm:$0xff]   ;;  %v1130_v4 = vld [vmem:[#allocation8 + $0x20] ss:$8 sps:$4 sm:$0xff]  }
  0x48   :  { %397 = vmatprep.subr.bf16.mxu0 %v1080_v22  ;;  %357 = vmatpush1.bf16.msra.mxu1 %v1081_v24  ;;  %v1127_v1 = vld [vmem:[#allocation8 + $0x130] ss:$8 sps:$4 sm:$0xff]   ;;  %v1135_v3 = vld [vmem:[#allocation8 + $0x124] ss:$8 sps:$4 sm:$0xff]   ;;  %v1133_v5 = vld [vmem:[#allocation8 + $0x120] ss:$8 sps:$4 sm:$0xff]  }
  0x49   :  { %358 = vmatprep.subr.bf16.mxu1 %v1082_v25  ;;  %v1138_v6 = vld [vmem:[#allocation8 + $0x14] ss:$8 sps:$4 sm:$0xff]   ;;  %v1136_v8 = vld [vmem:[#allocation8 + $0x10] ss:$8 sps:$4 sm:$0xff]   ;;  %v1144_v10 = vld [vmem:[#allocation8 + $0x4] ss:$8 sps:$4 sm:$0xff]  }
  0x4a   :  { %v1141_v7 = vld [vmem:[#allocation8 + $0x114] ss:$8 sps:$4 sm:$0xff]   ;;  %v1139_v9 = vld [vmem:[#allocation8 + $0x110] ss:$8 sps:$4 sm:$0xff]   ;;  %v1147_v11 = vld [vmem:[#allocation8 + $0x104] ss:$8 sps:$4 sm:$0xff]  }
  0x4b   :  { %398 = vmatpush1.bf16.msra.mxu0 %v1078_v23  ;;  %v1142_v12 = vld [vmem:[#allocation8] ss:$8 sps:$4 sm:$0xff]   ;;  %v1150_v14 = vld [vmem:[#allocation8 + $0xf4] ss:$8 sps:$4 sm:$0xff]   ;;  %v1148_v16 = vld [vmem:[#allocation8 + $0xf0] ss:$8 sps:$4 sm:$0xff]  }
  0x4c   :  { %399 = vmatprep.subr.bf16.mxu0 %v1086_v26  ;;  %359 = vmatpush1.bf16.msra.mxu1 %v1087_v27  ;;  %v1145_v13 = vld [vmem:[#allocation8 + $0x100] ss:$8 sps:$4 sm:$0xff]   ;;  %v1153_v15 = vld [vmem:[#allocation8 + $0x1f4] ss:$8 sps:$4 sm:$0xff]   ;;  %v1151_v17 = vld [vmem:[#allocation8 + $0x1f0] ss:$8 sps:$4 sm:$0xff]  }
  0x4d   :  { %360 = vmatprep.subr.bf16.mxu1 %v1088_v29  ;;  %v1156_v18 = vld [vmem:[#allocation8 + $0xe4] ss:$8 sps:$4 sm:$0xff]   ;;  %v1154_v20 = vld [vmem:[#allocation8 + $0xe0] ss:$8 sps:$4 sm:$0xff]   ;;  %v1162_v22 = vld [vmem:[#allocation8 + $0xd4] ss:$8 sps:$4 sm:$0xff]  }
  0x4e   :  { %v1159_v19 = vld [vmem:[#allocation8 + $0x1e4] ss:$8 sps:$4 sm:$0xff]   ;;  %v1157_v21 = vld [vmem:[#allocation8 + $0x1e0] ss:$8 sps:$4 sm:$0xff]   ;;  %v1165_v23 = vld [vmem:[#allocation8 + $0x1d4] ss:$8 sps:$4 sm:$0xff]  }
  0x4f   :  { %400 = vmatpush1.bf16.msra.mxu0 %v1084_v28  ;;  %v1160_v24 = vld [vmem:[#allocation8 + $0xd0] ss:$8 sps:$4 sm:$0xff]   ;;  %v1168_v26 = vld [vmem:[#allocation8 + $0xc4] ss:$8 sps:$4 sm:$0xff]   ;;  %v1166_v28 = vld [vmem:[#allocation8 + $0xc0] ss:$8 sps:$4 sm:$0xff]  }
  0x50   :  { %401 = vmatprep.subr.bf16.mxu0 %v1092_v30  ;;  %361 = vmatpush1.bf16.msra.mxu1 %v1093_v32  ;;  %v1163_v25 = vld [vmem:[#allocation8 + $0x1d0] ss:$8 sps:$4 sm:$0xff]   ;;  %v1171_v27 = vld [vmem:[#allocation8 + $0x1c4] ss:$8 sps:$4 sm:$0xff]   ;;  %v1169_v29 = vld [vmem:[#allocation8 + $0x1c0] ss:$8 sps:$4 sm:$0xff]  }
  0x51   :  { %362 = vmatprep.subr.bf16.mxu1 %v1094_v33  ;;  %v1174_v30 = vld [vmem:[#allocation8 + $0xb4] ss:$8 sps:$4 sm:$0xff]   ;;  %v1172_v32 = vld [vmem:[#allocation8 + $0xb0] ss:$8 sps:$4 sm:$0xff]   ;;  %v1181_v37 = vld [vmem:[#allocation8 + $0x1a0] ss:$8 sps:$4 sm:$0xff]  }
  0x52   :  { %v1175_v33 = vld [vmem:[#allocation8 + $0x1b0] ss:$8 sps:$4 sm:$0xff]   ;;  %s923_s20 = sshll.u32 %s1315_s19, 4  ;;  %s924_s20 = int_to_ptr.vmem [resolvable:$true] %s923_s20 }
  0x53   :  { %402 = vmatpush1.bf16.msra.mxu0 %v1090_v31  ;;  %v1177_v31 = vld [vmem:[#allocation8 + $0x1b4] ss:$8 sps:$4 sm:$0xff]   ;;  %p1281_p7 = scmp.lt.s32.totalorder %s924_s20, %s924_s20 }
  0x54   :  { %403 = vmatprep.subr.bf16.mxu0 %v1098_v34  ;;  %363 = vmatpush1.bf16.msra.mxu1 %v1099_v36  ;;  %v1180_v34 = vld [vmem:[#allocation8 + $0xa4] ss:$8 sps:$4 sm:$0xff]   ;;  %v1178_v36 = vld [vmem:[#allocation8 + $0xa0] ss:$8 sps:$4 sm:$0xff]  }
  0x55   :  { %833 = vmatprep.subr.bf16.mxu1 %v1102_v38  ;;  %v1186_v38 = vld [vmem:[#allocation8 + $0x94] ss:$8 sps:$4 sm:$0xff]  }
  0x57   :  { %404 = vmatpush1.bf16.msra.mxu0 %v1096_v35  ;;  %v1183_v35 = vld [vmem:[#allocation8 + $0x1a4] ss:$8 sps:$4 sm:$0xff]  }
  0x58   :  { %874 = vmatprep.subr.bf16.mxu0 %v1105_v39  ;;  %v1189_v39 = vld [vmem:[#allocation8 + $0x194] ss:$8 sps:$4 sm:$0xff]  }
  0xfa   :  { %v127_v41 = vpop.f32.mrf.mxu0 }
  0xfb   :  { %v128_v42 = vadd.f32 %v934_v40, %v127_v41  ;;  %v1184_v40 = vld [vmem:[#allocation8 + $0x90] ss:$8 sps:$4 sm:$0xff]  }
  0xfc   :  { %v1038_v43 = vpop.f32.mrf.mxu0  ;;  %v1187_v41 = vld [vmem:[#allocation8 + $0x190] ss:$8 sps:$4 sm:$0xff]  }
  0xfd   :  { %v133_v44 = vmax.f32 %v128_v42, 0.0  ;;  %v1192_v42 = vld [vmem:[#allocation8 + $0x84] ss:$8 sps:$4 sm:$0xff]  }
  0xfe   :  { %v130_v45 = vpop.f32.mrf.mxu0  ;;  %v1195_v43 = vld [vmem:[#allocation8 + $0x184] ss:$8 sps:$4 sm:$0xff]  }
  0xff   :  { %v134_v48 = vpack.c.bf16 %v133_v44, %v133_v44  ;;  %v1190_v44 = vld [vmem:[#allocation8 + $0x80] ss:$8 sps:$4 sm:$0xff]  }
 0x100   :  { %v1039_v51 = vpop.f32.mrf.mxu0  ;;  %v1193_v45 = vld [vmem:[#allocation8 + $0x180] ss:$8 sps:$4 sm:$0xff]  }
 0x101   :  { %381 = vmatmul.mubr.bf16.vlgmr.msra.gmra.mxu1 %v134_v48  ;;  %422 = vmatmul.mubr.bf16.vlgmr.msra.gmra.mxu0 %v134_v48 }
 0x102   :  { %834 = vmatpush1.bf16.msra.mxu1 %v1100_v46  ;;  %875 = vmatpush1.bf16.msra.mxu0 %v1103_v47  ;;  %v168_v46 = vlaneseq }
 0x103   :  { %835 = vmatprep.subr.bf16.mxu1 %v1108_v49  ;;  %876 = vmatprep.subr.bf16.mxu0 %v1111_v50  ;;  %v74_v50 = vld [vmem:[%s1374_s4 + $0x1] sm:$0xf] }
 0x104   :  { %v169_v47 = vshrl.u32 %v168_v46, 7 }
 0x106   :  { %836 = vmatpush1.bf16.msra.mxu1 %v1106_v52  ;;  %877 = vmatpush1.bf16.msra.mxu0 %v1109_v53  ;;  %v170_v48 = vsub.s32 0, %v169_v47  ;;  %v178_v49 = vsub.s32 2, %v169_v47  ;;  %v174_v51 = vsub.s32 1, %v169_v47  ;;  %v182_v52 = vsub.s32 3, %v169_v47 }
 0x107   :  { %837 = vmatprep.subr.bf16.mxu1 %v1114_v54  ;;  %878 = vmatprep.subr.bf16.mxu0 %v1117_v55 }
 0x108   :  { %v171_v53 = vrot.slane %v74_v50, %v170_v48  ;;  %v179_v54 = vrot.slane %v74_v50, %v178_v49  ;;  %v175_v55 = vrot.slane %v74_v50, %v174_v51 }
 0x10a   :  { %838 = vmatpush1.bf16.msra.mxu1 %v1112_v56  ;;  %879 = vmatpush1.bf16.msra.mxu0 %v1115_v57  ;;  %v183_v56 = vrot.slane %v74_v50, %v182_v52 }
 0x10b   :  { %839 = vmatprep.subr.bf16.mxu1 %v1120_v58  ;;  %880 = vmatprep.subr.bf16.mxu0 %v1123_v59 }
 0x10e   :  { %840 = vmatpush1.bf16.msra.mxu1 %v1118_v60  ;;  %881 = vmatpush1.bf16.msra.mxu0 %v1121_v61 }
 0x10f   :  { %841 = vmatprep.subr.bf16.mxu1 %v1126_v62  ;;  %882 = vmatprep.subr.bf16.mxu0 %v1129_v63 }
 0x112   :  { %842 = vmatpush1.bf16.msra.mxu1 %v1124_v0  ;;  %883 = vmatpush1.bf16.msra.mxu0 %v1127_v1 }
 0x113   :  { %843 = vmatprep.subr.bf16.mxu1 %v1132_v2  ;;  %884 = vmatprep.subr.bf16.mxu0 %v1135_v3 }
 0x116   :  { %844 = vmatpush1.bf16.msra.mxu1 %v1130_v4  ;;  %885 = vmatpush1.bf16.msra.mxu0 %v1133_v5 }
 0x117   :  { %845 = vmatprep.subr.bf16.mxu1 %v1138_v6  ;;  %886 = vmatprep.subr.bf16.mxu0 %v1141_v7 }
 0x11a   :  { %846 = vmatpush1.bf16.msra.mxu1 %v1136_v8  ;;  %887 = vmatpush1.bf16.msra.mxu0 %v1139_v9 }
 0x11b   :  { %847 = vmatprep.subr.bf16.mxu1 %v1144_v10  ;;  %888 = vmatprep.subr.bf16.mxu0 %v1147_v11 }
 0x11e   :  { %848 = vmatpush1.bf16.msra.mxu1 %v1142_v12  ;;  %889 = vmatpush1.bf16.msra.mxu0 %v1145_v13  ;;  %v75_v13 = vld [vmem:[%s1374_s4 + $0x5] sm:$0x3]  ;;  %s1276_s4 = scalar_lea.vmem %s924_s20, 256 }
 0x11f   :  { %849 = vmatprep.subr.bf16.mxu1 %v1150_v14  ;;  %890 = vmatprep.subr.bf16.mxu0 %v1153_v15  ;;  %v506_v14 = vrot.slane %v75_v13, %v170_v48  ;;  %v510_v15 = vrot.slane %v75_v13, %v174_v51  ;;  %p1277_p6 = scmp.ne.s32.totalorder %s924_s20, %s1276_s4  ;;  %p1282_p8 = scmp.lt.s32.totalorder %s1276_s4, %s1276_s4 }
 0x121   :  { %p1283_p9 = por %p1282_p8, %p1281_p7 }
 0x122   :  { %850 = vmatpush2.bf16.msra.mxu1 %v1148_v16  ;;  %891 = vmatpush2.bf16.msra.mxu0 %v1151_v17 }
 0x123   :  { %851 = vmatprep.subr.bf16.mxu1 %v1156_v18  ;;  %892 = vmatprep.subr.bf16.mxu0 %v1159_v19  ;;  %p1284_p10 = pnand %p1283_p9, %p1277_p6 }
 0x126   :  { %852 = vmatpush2.bf16.msra.mxu1 %v1154_v20  ;;  %893 = vmatpush2.bf16.msra.mxu0 %v1157_v21 }
 0x127   :  { %853 = vmatprep.subr.bf16.mxu1 %v1162_v22  ;;  %894 = vmatprep.subr.bf16.mxu0 %v1165_v23 }
 0x12a   :  { %854 = vmatpush2.bf16.msra.mxu1 %v1160_v24  ;;  %895 = vmatpush2.bf16.msra.mxu0 %v1163_v25 }
 0x12b   :  { %855 = vmatprep.subr.bf16.mxu1 %v1168_v26  ;;  %896 = vmatprep.subr.bf16.mxu0 %v1171_v27 }
 0x12e   :  { %856 = vmatpush2.bf16.msra.mxu1 %v1166_v28  ;;  %897 = vmatpush2.bf16.msra.mxu0 %v1169_v29 }
 0x12f   :  { %857 = vmatprep.subr.bf16.mxu1 %v1174_v30  ;;  %898 = vmatprep.subr.bf16.mxu0 %v1177_v31 }
 0x132   :  { %858 = vmatpush2.bf16.msra.mxu1 %v1172_v32  ;;  %899 = vmatpush2.bf16.msra.mxu0 %v1175_v33 }
 0x133   :  { %859 = vmatprep.subr.bf16.mxu1 %v1180_v34  ;;  %900 = vmatprep.subr.bf16.mxu0 %v1183_v35 }
 0x136   :  { %860 = vmatpush2.bf16.msra.mxu1 %v1178_v36  ;;  %901 = vmatpush2.bf16.msra.mxu0 %v1181_v37 }
 0x137   :  { %861 = vmatprep.subr.bf16.mxu1 %v1186_v38  ;;  %902 = vmatprep.subr.bf16.mxu0 %v1189_v39 }
 0x13a   :  { %862 = vmatpush2.bf16.msra.mxu1 %v1184_v40  ;;  %903 = vmatpush2.bf16.msra.mxu0 %v1187_v41 }
 0x13b   :  { %863 = vmatprep.subr.bf16.mxu1 %v1192_v42  ;;  %904 = vmatprep.subr.bf16.mxu0 %v1195_v43 }
 0x13e   :  { %864 = vmatpush2.bf16.msra.mxu1 %v1190_v44  ;;  %905 = vmatpush2.bf16.msra.mxu0 %v1193_v45 }
 0x1c1   :  { %v382_v57 = vpop.f32.mrf.mxu1  ;;  %v423_v58 = vpop.f32.mrf.mxu0 }
 0x1c2   :  { %v383_v59 = vadd.f32 %v382_v57, %v171_v53  ;;  %v424_v60 = vadd.f32 %v423_v58, %v179_v54 }
 0x1c3   :  { %v384_v61 = vpop.f32.mrf.mxu1  ;;  %v425_v62 = vpop.f32.mrf.mxu0 }
 0x1c4   :  { %v385_v63 = vadd.f32 %v384_v61, %v175_v55  ;;  %v426_v0 = vadd.f32 %v425_v62, %v183_v56  ;;  %v430_v1 = vmax.f32 %v383_v59, 0.0  ;;  %v432_v2 = vmax.f32 %v424_v60, 0.0 }
 0x1c5   :  { %v386_v3 = vpop.f32.mrf.mxu1  ;;  %v427_v4 = vpop.f32.mrf.mxu0 }
 0x1c6   :  { %v431_v5 = vmax.f32 %v385_v63, 0.0  ;;  %v433_v6 = vmax.f32 %v426_v0, 0.0  ;;  %v434_v11 = vpack.c.bf16 %v430_v1, %v430_v1  ;;  %v436_v12 = vpack.c.bf16 %v432_v2, %v432_v2 }
 0x1c7   :  { %v387_v7 = vpop.f32.mrf.mxu1  ;;  %v428_v8 = vpop.f32.mrf.mxu0 }
 0x1c8   :  { %v435_v9 = vpack.c.bf16 %v431_v5, %v431_v5  ;;  %v437_v10 = vpack.c.bf16 %v433_v6, %v433_v6 }
 0x1ca   :  { %865 = vmatprep.mubr.bf16.mxu1 %v435_v9  ;;  %906 = vmatprep.mubr.bf16.mxu0 %v437_v10 }
 0x1cb   :  { %866 = vmatmul.mubr.bf16.vlgmr.msra.gmra.mxu1 %v434_v11  ;;  %907 = vmatmul.mubr.bf16.vlgmr.msra.gmra.mxu0 %v436_v12 }
 0x28b   :  { %v867_v16 = vpop.f32.mrf.mxu1  ;;  %v908_v17 = vpop.f32.mrf.mxu0 }
 0x28c   :  { %v868_v18 = vadd.f32 %v867_v16, %v506_v14 }
 0x28d   :  { %v869_v19 = vpop.f32.mrf.mxu1  ;;  %v910_v20 = vpop.f32.mrf.mxu0 }
 0x28e   :  { %v909_v21 = vadd.f32 %v908_v17, %v868_v18  ;;  %v870_v22 = vadd.f32 %v869_v19, %v510_v15 }
 0x28f   :  { %v871_v23 = vpop.f32.mrf.mxu1  ;;  %v912_v24 = vpop.f32.mrf.mxu0 }
 0x290   :  { %915 = vst [vmem:[#allocation10] sm:$0xff] %v909_v21  ;;  %v911_v25 = vadd.f32 %v910_v20, %v870_v22 }
 0x291   :  { %v872_v26 = vpop.f32.mrf.mxu1  ;;  %v913_v27 = vpop.f32.mrf.mxu0 }
 0x292   :  { %916 = vst [vmem:[#allocation10 + $0x8] sm:$0xff] %v911_v25 }
 0x293   :  { %1287 = shalt.err (!%p1284_p10)
}
 0x294   :  { %926 = dma.vmem_to_hbm [thread:$0]  %s924_s20, 256, %s1375_s5, [#allocation4]  }
 0x295   :  { %1302 = dma.done.wait [#allocation4], 256  }
 0x296   :  { %1303 = vsyncadd [#allocation4], 4294967040 }
 0x297   :  { %930 = vsyncpa [#allocation3], 1 }
 0x298   :  { %931 = vsyncpa [#allocation6], 1 }
 0x299   :  { %932 = vsyncpa [#allocation9], 1 }
 0x29a   :  { %933 = vsyncpa [#allocation4], 1 }

</bundles_post_ra>
